<compile_context>
chip_gen: v7x
topology: tpu7x:2x2x1
jax: 0.10.0
libtpu: 0.0.40
codegen_flags: <defaults>
</compile_context>

<pallas_src>
import jax
import jax.numpy as jnp
from jax import lax
from jax.experimental import pallas as pl
from jax.experimental.pallas import tpu as pltpu

_PAD = 24  # feature dims (19/10/8/5) zero-padded into a uniform 24-wide slab
_LAYER_DIMS = [(10, 19), (8, 10), (5, 8), (8, 5), (10, 8), (19, 10)]  # (out, in)
_N_LAYERS = len(_LAYER_DIMS)


# -----------------------------------------------------------------------------
# Kernel: full encoder/decoder on one batch tile, lane-dense internal layout.
# -----------------------------------------------------------------------------
def ae_kernel(x_ref, w_ref, b_ref, dec_ref, enc_ref):
    # x_ref:   (Bt, 19)      natural-layout input tile
    # w_ref:   (6, 24, 24)   zero-padded PyTorch-layout weights (out, in)
    # b_ref:   (6, 24, 1)    zero-padded biases (column vectors)
    # dec_ref: (Bt, 19)      decoded output tile (natural layout)
    # enc_ref: (Bt, 5)       encoded output tile (natural layout)
    f32 = jnp.float32
    x = x_ref[...]                       # io dtype
    w = w_ref[...]                       # param dtype (bf16 or f32)
    b = b_ref[...].astype(f32)
    cdt = w.dtype                        # MXU operand dtype

    # ---- encoder (lane-dense: (features, Bt)) ----
    # Layer 0: input transpose absorbed into the contraction:
    #   (16, 19) . (Bt, 19)^T -> (16, Bt)
    h = lax.dot_general(
        w[0, :16, :19], x.astype(cdt),
        dimension_numbers=(((1,), (1,)), ((), ())),
        preferred_element_type=f32)
    h = jnp.maximum(h + b[0, :16], 0.0)                     # (16, Bt), rows>=10 are 0

    h = jnp.dot(w[1, :8, :16], h.astype(cdt), preferred_element_type=f32)
    h = jnp.maximum(h + b[1, :8], 0.0)                      # (8, Bt)

    enc = jnp.dot(w[2, :8, :8], h.astype(cdt), preferred_element_type=f32)
    enc = enc + b[2, :8]                                    # (8, Bt), rows>=5 are 0

    # ---- decoder ----
    h = jnp.dot(w[3, :8, :8], enc.astype(cdt), preferred_element_type=f32)
    h = jnp.maximum(h + b[3, :8], 0.0)                      # (8, Bt)

    h = jnp.dot(w[4, :16, :8], h.astype(cdt), preferred_element_type=f32)
    h = jnp.maximum(h + b[4, :16], 0.0)                     # (16, Bt), rows>=10 are 0

    dec = jnp.dot(w[5, :, :16], h.astype(cdt), preferred_element_type=f32)
    dec = jnp.tanh(dec + b[5])                              # (24, Bt), rows>=19 are 0

    # Lane-dense -> natural layout via in-VMEM (XLU) transpose, then store.
    dec_ref[...] = jnp.transpose(dec)[:, :19].astype(dec_ref.dtype)   # (Bt, 19)
    enc_ref[...] = jnp.transpose(enc)[:, :5].astype(enc_ref.dtype)    # (Bt, 5)


# -----------------------------------------------------------------------------
# Wrapper
# -----------------------------------------------------------------------------
def _pack_params(params, dtype):
    """Pack 6 (W (out,in), b (out,)) PyTorch-layout pairs into padded slabs."""
    assert len(params) == _N_LAYERS
    w_slab = jnp.zeros((_N_LAYERS, _PAD, _PAD), dtype)
    b_slab = jnp.zeros((_N_LAYERS, _PAD, 1), dtype)
    for i, ((out_f, in_f), (w, b)) in enumerate(zip(_LAYER_DIMS, params)):
        assert w.shape == (out_f, in_f), (w.shape, (out_f, in_f))
        assert b.shape == (out_f,), (b.shape, (out_f,))
        w_slab = w_slab.at[i, :out_f, :in_f].set(w.astype(dtype))
        b_slab = b_slab.at[i, :out_f, 0].set(b.astype(dtype))
    return w_slab, b_slab


def _default_batch_tile(B):
    if B % 128 != 0:
        return B  # small / ragged batch: single tile (block dim == full dim)
    # Biggest lane-dense tile that still leaves >= 2 grid steps (amortizes the
    # ~0.35us/step fixed cost and lets the "parallel" axis shard across the
    # two v7x TensorCores).  VMEM footprint at 4096 stays in the low MBs.
    for t in (4096, 2048, 1024, 512, 256, 128):
        if B % t == 0 and B // t >= 2:
            return t
    return B  # B <= 128: single tile


def ae_forward(x, params, *, batch_tile=None, param_dtype=jnp.bfloat16,
               out_dtype=None):
    """AE forward pass. x: (B, 19). Returns (decoded (B, 19), encoded (B, 5))."""
    B, F_in = x.shape
    assert F_in == 19
    if out_dtype is None:
        out_dtype = x.dtype
    if batch_tile is None:
        batch_tile = _default_batch_tile(B)
    assert B % batch_tile == 0, "B must be a multiple of batch_tile (no ragged tail)"
    assert batch_tile % 128 == 0 or batch_tile == B, (
        "lane-dense tiling needs batch_tile % 128 == 0 (or batch_tile == B)")
    grid = (B // batch_tile,)

    w_slab, b_slab = _pack_params(params, param_dtype)

    decoded, encoded = pl.pallas_call(
        ae_kernel,
        out_shape=(
            jax.ShapeDtypeStruct((B, 19), out_dtype),
            jax.ShapeDtypeStruct((B, 5), out_dtype),
        ),
        grid_spec=pltpu.PrefetchScalarGridSpec(
            num_scalar_prefetch=0,
            grid=grid,
            in_specs=[
                pl.BlockSpec((batch_tile, 19), lambda i: (i, 0)),
                pl.BlockSpec((_N_LAYERS, _PAD, _PAD), lambda i: (0, 0, 0)),
                pl.BlockSpec((_N_LAYERS, _PAD, 1), lambda i: (0, 0, 0)),
            ],
            out_specs=[
                pl.BlockSpec((batch_tile, 19), lambda i: (i, 0)),
                pl.BlockSpec((batch_tile, 5), lambda i: (i, 0)),
            ],
        ),
        compiler_params=pltpu.CompilerParams(
            dimension_semantics=("parallel",),
            vmem_limit_bytes=48 * 1024 * 1024,  # generous headroom, < v7x's 64 MiB
        ),
    )(x, w_slab, b_slab)
    return decoded, encoded


# -----------------------------------------------------------------------------
# Deterministic PyTorch-style init (uniform(-1/sqrt(fan_in), +1/sqrt(fan_in))).
# Weights are PyTorch-native (out_features, in_features); biases (out_features,).
# -----------------------------------------------------------------------------
def init_params(key):
    params = []
    for (out_f, in_f) in _LAYER_DIMS:
        key, kw, kb = jax.random.split(key, 3)
        bound = 1.0 / (in_f ** 0.5)
        w = jax.random.uniform(kw, (out_f, in_f), jnp.float32, -bound, bound)
        b = jax.random.uniform(kb, (out_f,), jnp.float32, -bound, bound)
        params.append((w, b))
    return params


def ae_reference(x, params):
    """Pure-JAX reference (PyTorch semantics: y = x @ W.T + b)."""
    (w1, b1), (w2, b2), (w3, b3), (w4, b4), (w5, b5), (w6, b6) = params
    h = jnp.maximum(x @ w1.T + b1, 0.0)
    h = jnp.maximum(h @ w2.T + b2, 0.0)
    enc = h @ w3.T + b3
    h = jnp.maximum(enc @ w4.T + b4, 0.0)
    h = jnp.maximum(h @ w5.T + b5, 0.0)
    dec = jnp.tanh(h @ w6.T + b6)
    return dec, enc


if __name__ == "__main__":
    key = jax.random.PRNGKey(0)
    key, kx = jax.random.split(key)

    B = 512  # small, but gives a 2-step grid (tile 256) exercising the pipeline
    x = jax.random.normal(kx, (B, 19), jnp.float32)
    params = init_params(key)

    dec_ref, enc_ref = ae_reference(x, params)

    # 1) f32 weights: tight correctness check against the pure-JAX reference.
    dec32, enc32 = ae_forward(x, params, param_dtype=jnp.float32,
                              out_dtype=jnp.float32)
    jax.block_until_ready((dec32, enc32))
    assert dec32.shape == (B, 19) and enc32.shape == (B, 5)
    assert jnp.allclose(dec32, dec_ref, atol=1e-3, rtol=1e-3)
    assert jnp.allclose(enc32, enc_ref, atol=1e-3, rtol=1e-3)

    # 2) Default fast path: bf16 MXU operands, f32 accumulation (looser tol).
    dec16, enc16 = ae_forward(x, params)
    jax.block_until_ready((dec16, enc16))
    assert dec16.shape == (B, 19) and enc16.shape == (B, 5)
    assert jnp.allclose(dec16.astype(jnp.float32), dec_ref, atol=5e-2, rtol=5e-2)
    assert jnp.allclose(enc16.astype(jnp.float32), enc_ref, atol=5e-2, rtol=5e-2)

    print("KERNEL_OK")
</pallas_src>

<mosaic_0001>
module attributes {stable_mosaic.version = 11 : i64} {
  func.func @ae_kernel(%arg0: i32, %arg1: memref<256x19xf32, #tpu.memory_space<vmem>>, %arg2: memref<6x24x24xf32, #tpu.memory_space<vmem>>, %arg3: memref<6x24x1xf32, #tpu.memory_space<vmem>>, %arg4: memref<256x19xf32, #tpu.memory_space<vmem>>, %arg5: memref<256x5xf32, #tpu.memory_space<vmem>>) attributes {dimension_semantics = [#tpu.dimension_semantics<parallel>], iteration_bounds = array<i64: 2>, scalar_prefetch = 0 : i64, scratch_operands = 0 : i64, tpu.core_type = #tpu.core_type<tc>, window_params = [{transform_indices = @transform_0, window_bounds = array<i64: 256, 19>}, {pipeline_mode = #tpu.pipeline_mode<synchronous>, transform_indices = @transform_1, window_bounds = array<i64: 6, 24, 24>}, {pipeline_mode = #tpu.pipeline_mode<synchronous>, transform_indices = @transform_2, window_bounds = array<i64: 6, 24, 1>}, {transform_indices = @transform_3, window_bounds = array<i64: 256, 19>}, {transform_indices = @transform_4, window_bounds = array<i64: 256, 5>}]} {
    %c0 = arith.constant 0 : index
    %c0_0 = arith.constant 0 : index
    %0 = vector.load %arg1[%c0, %c0_0] : memref<256x19xf32, #tpu.memory_space<vmem>>, vector<256x19xf32>
    %c0_1 = arith.constant 0 : index
    %c0_2 = arith.constant 0 : index
    %c0_3 = arith.constant 0 : index
    %1 = vector.load %arg2[%c0_1, %c0_2, %c0_3] : memref<6x24x24xf32, #tpu.memory_space<vmem>>, vector<6x24x24xf32>
    %c0_4 = arith.constant 0 : index
    %c0_5 = arith.constant 0 : index
    %c0_6 = arith.constant 0 : index
    %2 = vector.load %arg3[%c0_4, %c0_5, %c0_6] : memref<6x24x1xf32, #tpu.memory_space<vmem>>, vector<6x24x1xf32>
    %3 = vector.extract_strided_slice %1 {offsets = [0, 0, 0], sizes = [1, 16, 19], strides = [1, 1, 1]} : vector<6x24x24xf32> to vector<1x16x19xf32>
    %4 = vector.shape_cast %3 : vector<1x16x19xf32> to vector<16x19xf32>
    %cst = arith.constant dense<0.000000e+00> : vector<16x256xf32>
    %5 = tpu.matmul %4, %0, %cst {dimension_numbers = #tpu.dot_dimension_numbers<[1], [1], [0], [0], [0, 0, 1, 0], [], []>} : vector<16x19xf32>, vector<256x19xf32>, vector<16x256xf32> -> vector<16x256xf32>
    %6 = vector.extract_strided_slice %2 {offsets = [0, 0, 0], sizes = [1, 16, 1], strides = [1, 1, 1]} : vector<6x24x1xf32> to vector<1x16x1xf32>
    %7 = vector.shape_cast %6 : vector<1x16x1xf32> to vector<16x1xf32>
    %8 = vector.broadcast %7 : vector<16x1xf32> to vector<16x256xf32>
    %9 = arith.addf %5, %8 : vector<16x256xf32>
    %cst_7 = arith.constant 0.000000e+00 : f32
    %10 = vector.broadcast %cst_7 : f32 to vector<16x256xf32>
    %11 = arith.maximumf %9, %10 : vector<16x256xf32>
    %12 = vector.extract_strided_slice %1 {offsets = [1, 0, 0], sizes = [1, 8, 16], strides = [1, 1, 1]} : vector<6x24x24xf32> to vector<1x8x16xf32>
    %13 = vector.shape_cast %12 : vector<1x8x16xf32> to vector<8x16xf32>
    %cst_8 = arith.constant dense<0.000000e+00> : vector<8x256xf32>
    %14 = tpu.matmul %13, %11, %cst_8 {dimension_numbers = #tpu.dot_dimension_numbers<[1], [0], [0], [1], [0, 0, 1, 1], [], []>} : vector<8x16xf32>, vector<16x256xf32>, vector<8x256xf32> -> vector<8x256xf32>
    %15 = vector.extract_strided_slice %2 {offsets = [1, 0, 0], sizes = [1, 8, 1], strides = [1, 1, 1]} : vector<6x24x1xf32> to vector<1x8x1xf32>
    %16 = vector.shape_cast %15 : vector<1x8x1xf32> to vector<8x1xf32>
    %17 = vector.broadcast %16 : vector<8x1xf32> to vector<8x256xf32>
    %18 = arith.addf %14, %17 : vector<8x256xf32>
    %cst_9 = arith.constant 0.000000e+00 : f32
    %19 = vector.broadcast %cst_9 : f32 to vector<8x256xf32>
    %20 = arith.maximumf %18, %19 : vector<8x256xf32>
    %21 = vector.extract_strided_slice %1 {offsets = [2, 0, 0], sizes = [1, 8, 8], strides = [1, 1, 1]} : vector<6x24x24xf32> to vector<1x8x8xf32>
    %22 = vector.shape_cast %21 : vector<1x8x8xf32> to vector<8x8xf32>
    %cst_10 = arith.constant dense<0.000000e+00> : vector<8x256xf32>
    %23 = tpu.matmul %22, %20, %cst_10 {dimension_numbers = #tpu.dot_dimension_numbers<[1], [0], [0], [1], [0, 0, 1, 1], [], []>} : vector<8x8xf32>, vector<8x256xf32>, vector<8x256xf32> -> vector<8x256xf32>
    %24 = vector.extract_strided_slice %2 {offsets = [2, 0, 0], sizes = [1, 8, 1], strides = [1, 1, 1]} : vector<6x24x1xf32> to vector<1x8x1xf32>
    %25 = vector.shape_cast %24 : vector<1x8x1xf32> to vector<8x1xf32>
    %26 = vector.broadcast %25 : vector<8x1xf32> to vector<8x256xf32>
    %27 = arith.addf %23, %26 : vector<8x256xf32>
    %28 = vector.extract_strided_slice %1 {offsets = [3, 0, 0], sizes = [1, 8, 8], strides = [1, 1, 1]} : vector<6x24x24xf32> to vector<1x8x8xf32>
    %29 = vector.shape_cast %28 : vector<1x8x8xf32> to vector<8x8xf32>
    %cst_11 = arith.constant dense<0.000000e+00> : vector<8x256xf32>
    %30 = tpu.matmul %29, %27, %cst_11 {dimension_numbers = #tpu.dot_dimension_numbers<[1], [0], [0], [1], [0, 0, 1, 1], [], []>} : vector<8x8xf32>, vector<8x256xf32>, vector<8x256xf32> -> vector<8x256xf32>
    %31 = vector.extract_strided_slice %2 {offsets = [3, 0, 0], sizes = [1, 8, 1], strides = [1, 1, 1]} : vector<6x24x1xf32> to vector<1x8x1xf32>
    %32 = vector.shape_cast %31 : vector<1x8x1xf32> to vector<8x1xf32>
    %33 = vector.broadcast %32 : vector<8x1xf32> to vector<8x256xf32>
    %34 = arith.addf %30, %33 : vector<8x256xf32>
    %cst_12 = arith.constant 0.000000e+00 : f32
    %35 = vector.broadcast %cst_12 : f32 to vector<8x256xf32>
    %36 = arith.maximumf %34, %35 : vector<8x256xf32>
    %37 = vector.extract_strided_slice %1 {offsets = [4, 0, 0], sizes = [1, 16, 8], strides = [1, 1, 1]} : vector<6x24x24xf32> to vector<1x16x8xf32>
    %38 = vector.shape_cast %37 : vector<1x16x8xf32> to vector<16x8xf32>
    %cst_13 = arith.constant dense<0.000000e+00> : vector<16x256xf32>
    %39 = tpu.matmul %38, %36, %cst_13 {dimension_numbers = #tpu.dot_dimension_numbers<[1], [0], [0], [1], [0, 0, 1, 1], [], []>} : vector<16x8xf32>, vector<8x256xf32>, vector<16x256xf32> -> vector<16x256xf32>
    %40 = vector.extract_strided_slice %2 {offsets = [4, 0, 0], sizes = [1, 16, 1], strides = [1, 1, 1]} : vector<6x24x1xf32> to vector<1x16x1xf32>
    %41 = vector.shape_cast %40 : vector<1x16x1xf32> to vector<16x1xf32>
    %42 = vector.broadcast %41 : vector<16x1xf32> to vector<16x256xf32>
    %43 = arith.addf %39, %42 : vector<16x256xf32>
    %cst_14 = arith.constant 0.000000e+00 : f32
    %44 = vector.broadcast %cst_14 : f32 to vector<16x256xf32>
    %45 = arith.maximumf %43, %44 : vector<16x256xf32>
    %46 = vector.extract_strided_slice %1 {offsets = [5, 0, 0], sizes = [1, 24, 16], strides = [1, 1, 1]} : vector<6x24x24xf32> to vector<1x24x16xf32>
    %47 = vector.shape_cast %46 : vector<1x24x16xf32> to vector<24x16xf32>
    %cst_15 = arith.constant dense<0.000000e+00> : vector<24x256xf32>
    %48 = tpu.matmul %47, %45, %cst_15 {dimension_numbers = #tpu.dot_dimension_numbers<[1], [0], [0], [1], [0, 0, 1, 1], [], []>} : vector<24x16xf32>, vector<16x256xf32>, vector<24x256xf32> -> vector<24x256xf32>
    %49 = vector.extract_strided_slice %2 {offsets = [5, 0, 0], sizes = [1, 24, 1], strides = [1, 1, 1]} : vector<6x24x1xf32> to vector<1x24x1xf32>
    %50 = vector.shape_cast %49 : vector<1x24x1xf32> to vector<24x1xf32>
    %51 = vector.broadcast %50 : vector<24x1xf32> to vector<24x256xf32>
    %52 = arith.addf %48, %51 : vector<24x256xf32>
    %53 = math.tanh %52 : vector<24x256xf32>
    %54 = tpu.transpose %53, [1, 0] : vector<24x256xf32> -> vector<256x24xf32>
    %55 = vector.extract_strided_slice %54 {offsets = [0, 0], sizes = [256, 19], strides = [1, 1]} : vector<256x24xf32> to vector<256x19xf32>
    %c0_16 = arith.constant 0 : index
    %c0_17 = arith.constant 0 : index
    %56 = vector.load %arg4[%c0_16, %c0_17] : memref<256x19xf32, #tpu.memory_space<vmem>>, vector<256x19xf32>
    tpu.vector_store %arg4[%c0_16, %c0_17], %55 {strides = array<i32>} : memref<256x19xf32, #tpu.memory_space<vmem>>, vector<256x19xf32>,
    %57 = tpu.transpose %27, [1, 0] : vector<8x256xf32> -> vector<256x8xf32>
    %58 = vector.extract_strided_slice %57 {offsets = [0, 0], sizes = [256, 5], strides = [1, 1]} : vector<256x8xf32> to vector<256x5xf32>
    %c0_18 = arith.constant 0 : index
    %c0_19 = arith.constant 0 : index
    %59 = vector.load %arg5[%c0_18, %c0_19] : memref<256x5xf32, #tpu.memory_space<vmem>>, vector<256x5xf32>
    tpu.vector_store %arg5[%c0_18, %c0_19], %58 {strides = array<i32>} : memref<256x5xf32, #tpu.memory_space<vmem>>, vector<256x5xf32>,
    return
  }
  func.func @transform_0(%arg0: i32) -> (i32, i32) {
    %c0_i32 = arith.constant 0 : i32
    %c0_i32_0 = arith.constant 0 : i32
    return %arg0, %c0_i32 : i32, i32
  }
  func.func @transform_1(%arg0: i32) -> (i32, i32, i32) {
    %c0_i32 = arith.constant 0 : i32
    %c0_i32_0 = arith.constant 0 : i32
    %c0_i32_1 = arith.constant 0 : i32
    %c0_i32_2 = arith.constant 0 : i32
    return %c0_i32, %c0_i32_0, %c0_i32_1 : i32, i32, i32
  }
  func.func @transform_2(%arg0: i32) -> (i32, i32, i32) {
    %c0_i32 = arith.constant 0 : i32
    %c0_i32_0 = arith.constant 0 : i32
    %c0_i32_1 = arith.constant 0 : i32
    %c0_i32_2 = arith.constant 0 : i32
    return %c0_i32, %c0_i32_0, %c0_i32_1 : i32, i32, i32
  }
  func.func @transform_3(%arg0: i32) -> (i32, i32) {
    %c0_i32 = arith.constant 0 : i32
    %c0_i32_0 = arith.constant 0 : i32
    return %arg0, %c0_i32 : i32, i32
  }
  func.func @transform_4(%arg0: i32) -> (i32, i32) {
    %c0_i32 = arith.constant 0 : i32
    %c0_i32_0 = arith.constant 0 : i32
    return %arg0, %c0_i32 : i32, i32
  }
}

</mosaic_0001>

<bundles_post_ra>
// kernel: tpu_custom_call.1
= control target key start
LH: loop header
LB: loop body
LE: loop exit
PB: predicated region body
PF: predicated region fallthrough
CT: control target
= control target key end

     0   :  { %s1403_s15 = smov 0   ;;  %s1724_s0 = inlined_call_operand.vmem [shape: f32[512,19], index: 0, kind: input, shape index: {}]   ;;  %s1725_s1 = inlined_call_operand.vmem [shape: f32[6,24,24], index: 1, kind: input, shape index: {}]   ;;  %s1726_s2 = inlined_call_operand.vmem [shape: f32[6,24,1], index: 2, kind: input, shape index: {}]   ;;  %s1727_s3 = inlined_call_operand.vmem [shape: f32[512,19], index: 3, kind: output, shape index: {0}]   ;;  %s1728_s4 = inlined_call_operand.vmem [shape: f32[512,5], index: 4, kind: output, shape index: {1}]  }
   0x1 LB: > { %s1197_s16 = sadd.s32 4294967295, %s1374_s15   ;;  %p1201_p0 = scmp.ge.s32.totalorder %s1374_s15, 1  ;;  %s1374_s15 = sphi %s1403_s15, %s15_s15  }
   0x2   : > { %p166_p1 = scmp.lt.s32.totalorder %s1374_s15, 3 }
   0x4   : > { %p167_p2 = pnand %p1201_p0, %p166_p1 }
   0x5   : > { %s1202_s17 = sshll.u32 (!%p167_p2), %s1197_s16, 5  ;;  %vm277_vm0 = vcmask (!%p167_p2), 154624   ;;  %v1414_v0 = vld [vmem:[%s1725_s1] sm:$0xff] (!%p167_p2)  ;;  %v1376_v2 = vmov (!%p167_p2), 0   ;;  %v258_v3 = vld [vmem:[%s1726_s2 + $0x8] sm:$0xff] (!%p167_p2)  ;;  %v1377_v57 = vmov (!%p167_p2), 0.0  }
   0x6   : > { %170 = sbr.rel (%p167_p2) target bundleno = 1672 (0x688), region = 32  ;;  %v257_v1 = vld [vmem:[%s1726_s2] sm:$0xff] (!%p167_p2)  ;;  %p198_p3 = scmp.lt.s32.totalorder (!%p167_p2), %s1202_s17, 63  ;;  %1284 = vmatprep.mubr.msk.f32.mxu0 (!%p167_p2), %vm277_vm0, %v1414_v0  ;;  %1354 = vset.pattern.permute.xlu0 (!%p167_p2), %v1376_v2  ;;  %vm1434_vm1 = vmpackc.low (!%p167_p2), %vm277_vm0, %vm277_vm0  ;;  %v261_v5 = vld [vmem:[%s1726_s2 + $0x48] sm:$0xff] (!%p167_p2)  ;;  %vm466_vm2 = vcmask (!%p167_p2), 130048   ;;  %vm548_vm3 = vcmask (!%p167_p2), 64512  }
   0x7   : > { %269 = vperm.xlu0 (!%p167_p2), %1354, %v257_v1   ;;  %1355 = vset.pattern.permute.xlu1 (!%p167_p2), %v1376_v2  ;;  %v263_v15 = vld [vmem:[%s1726_s2 + $0x68] sm:$0xff] (!%p167_p2)  ;;  %v265_v21 = vld [vmem:[%s1726_s2 + $0x80] sm:$0xff] (!%p167_p2)  ;;  %v259_v58 = vld [vmem:[%s1726_s2 + $0x18] sm:$0xff] (!%p167_p2)  ;;  %vm1074_vm4 = vcmask (!%p167_p2), 39936  }
   0x8   : > { %v248_v56 = vld [vmem:[%s1725_s1 + $0x8] sm:$0xff] (!%p167_p2)  ;;  %534 = vmatprep.mubr.f32.mxu1 (!%p167_p2), %v1377_v57  ;;  %463 = vperm.xlu1 (!%p167_p2), %1355, %v259_v58   ;;  %v260_v59 = vld [vmem:[%s1726_s2 + $0x30] sm:$0xff] (!%p167_p2)  ;;  %v262_v60 = vld [vmem:[%s1726_s2 + $0x60] sm:$0xff] (!%p167_p2) }
   0x9   : > { %v264_v61 = vld [vmem:[%s1726_s2 + $0x78] sm:$0xff] (!%p167_p2)  ;;  %v266_v62 = vld [vmem:[%s1726_s2 + $0x88] sm:$0xff] (!%p167_p2) }
   0xa   : > { %v256_v58 = vld [vmem:[%s1725_s1 + $0x88] sm:$0xff] (!%p167_p2) }
   0xb   : > { %274 = vperm.xlu0 (!%p167_p2), %1354, %v258_v3  }
   0xc   : > { %545 = vperm.xlu1 (!%p167_p2), %1355, %v260_v59  }
   0xd   : > { %s1732_s17 = smov (!%p198_p3, %s1202_s17), 63 }
   0xe   : > { %s1424_s24 = sshll.u32 %s1732_s17, 3 }
   0xf   : > { %s1430_s27 = scalar_lea.vmem %s1724_s0, %s1424_s24  ;;  %625 = vperm.xlu0 %1354, %v261_v5   ;;  %s1585_s14 = scalar_lea.vmem %s1727_s3, %s1424_s24 }
  0x10   : > { %v231_v6 = vld [vmem:[%s1430_s27 + $0x80] sm:$0xff]  ;;  %v232_v7 = vld [vmem:[%s1430_s27 + $0x88] sm:$0xff]  ;;  %v233_v11 = vld [vmem:[%s1430_s27 + $0x90] sm:$0xff]  ;;  %706 = vperm.xlu1 %1355, %v262_v60   ;;  %s1655_s18 = scalar_lea.vmem %s1728_s4, %s1424_s24 }
  0x11   : > { %v215_v8 = vld [vmem:[%s1430_s27] sm:$0xff]  ;;  %v1288_v9 = vpack.c.bf16 %v232_v7, %v231_v6  ;;  %v216_v10 = vld [vmem:[%s1430_s27 + $0x8] sm:$0xff]  ;;  %v234_v12 = vld [vmem:[%s1430_s27 + $0x98] sm:$0xff] }
  0x12   : > { %v1291_v13 = vpack.c.bf16 %v216_v10, %v215_v8  ;;  %v1294_v14 = vpack.c.bf16 %v234_v12, %v233_v11  ;;  %v217_v16 = vld [vmem:[%s1430_s27 + $0x10] sm:$0xff]  ;;  %v218_v17 = vld [vmem:[%s1430_s27 + $0x18] sm:$0xff]  ;;  %v235_v18 = vld [vmem:[%s1430_s27 + $0xa0] sm:$0xff] }
  0x13   : > { %1290 = vmatprep.subr.msk.bf16.mxu0 %vm1434_vm1, %v1288_v9  ;;  %v236_v19 = vld [vmem:[%s1430_s27 + $0xa8] sm:$0xff]  ;;  %711 = vperm.xlu0 %1354, %v263_v15   ;;  %v1297_v20 = vpack.c.bf16 %v218_v17, %v217_v16  ;;  %v219_v23 = vld [vmem:[%s1430_s27 + $0x20] sm:$0xff]  ;;  %v237_v25 = vld [vmem:[%s1430_s27 + $0xb0] sm:$0xff] }
  0x14   : > { %1293 = vmatpush3.bf16.xpose.msk.msra.mxu0 %vm1434_vm1, %v1291_v13  ;;  %v1300_v22 = vpack.c.bf16 %v236_v19, %v235_v18  ;;  %v220_v24 = vld [vmem:[%s1430_s27 + $0x28] sm:$0xff]  ;;  %v238_v26 = vld [vmem:[%s1430_s27 + $0xb8] sm:$0xff]  ;;  %v221_v29 = vld [vmem:[%s1430_s27 + $0x30] sm:$0xff]  ;;  %803 = vperm.xlu1 %1355, %v264_v61  }
  0x15   : > { %1296 = vmatprep.subr.msk.bf16.mxu0 %vm1434_vm1, %v1294_v14  ;;  %v1303_v27 = vpack.c.bf16 %v220_v24, %v219_v23  ;;  %v1306_v28 = vpack.c.bf16 %v238_v26, %v237_v25  ;;  %v222_v30 = vld [vmem:[%s1430_s27 + $0x38] sm:$0xff]  ;;  %v239_v31 = vld [vmem:[%s1430_s27 + $0xc0] sm:$0xff]  ;;  %v240_v32 = vld [vmem:[%s1430_s27 + $0xc8] sm:$0xff] }
  0x16   : > { %v1309_v33 = vpack.c.bf16 %v222_v30, %v221_v29  ;;  %v1312_v34 = vpack.c.bf16 %v240_v32, %v239_v31  ;;  %v223_v35 = vld [vmem:[%s1430_s27 + $0x40] sm:$0xff]  ;;  %v224_v36 = vld [vmem:[%s1430_s27 + $0x48] sm:$0xff]  ;;  %v241_v37 = vld [vmem:[%s1430_s27 + $0xd0] sm:$0xff] }
  0x17   : > { %808 = vperm.xlu0 %1354, %v265_v21   ;;  %v242_v38 = vld [vmem:[%s1430_s27 + $0xd8] sm:$0xff]  ;;  %v1315_v39 = vpack.c.bf16 %v224_v36, %v223_v35  ;;  %v225_v41 = vld [vmem:[%s1430_s27 + $0x50] sm:$0xff]  ;;  %v243_v43 = vld [vmem:[%s1430_s27 + $0xe0] sm:$0xff] }
  0x18   : > { %v1318_v40 = vpack.c.bf16 %v242_v38, %v241_v37  ;;  %v226_v42 = vld [vmem:[%s1430_s27 + $0x58] sm:$0xff]  ;;  %v244_v44 = vld [vmem:[%s1430_s27 + $0xe8] sm:$0xff]  ;;  %v227_v47 = vld [vmem:[%s1430_s27 + $0x60] sm:$0xff]  ;;  %813 = vperm.xlu1 %1355, %v266_v62  }
  0x19   : > { %v1321_v45 = vpack.c.bf16 %v226_v42, %v225_v41  ;;  %v1324_v46 = vpack.c.bf16 %v244_v44, %v243_v43  ;;  %v228_v48 = vld [vmem:[%s1430_s27 + $0x68] sm:$0xff]  ;;  %v245_v49 = vld [vmem:[%s1430_s27 + $0xf0] sm:$0xff]  ;;  %v246_v50 = vld [vmem:[%s1430_s27 + $0xf8] sm:$0xff] }
  0x1a   : > { %v1327_v51 = vpack.c.bf16 %v228_v48, %v227_v47  ;;  %v1330_v52 = vpack.c.bf16 %v246_v50, %v245_v49  ;;  %v229_v53 = vld [vmem:[%s1430_s27 + $0x70] sm:$0xff]  ;;  %v230_v54 = vld [vmem:[%s1430_s27 + $0x78] sm:$0xff]  ;;  %v251_v29 = vld [vmem:[%s1725_s1 + $0x48] sm:$0xff] }
  0x1b   : > { %v1333_v55 = vpack.c.bf16 %v230_v54, %v229_v53  ;;  %v249_v15 = vld [vmem:[%s1725_s1 + $0x18] sm:$0xff]  ;;  %v250_v23 = vld [vmem:[%s1725_s1 + $0x30] sm:$0xff]  ;;  %v252_v37 = vld [vmem:[%s1725_s1 + $0x60] sm:$0xff] }
  0x1c   : > { %1299 = vmatpush3.bf16.xpose.msk.msra.mxu0 %vm1434_vm1, %v1297_v20  ;;  %v253_v38 = vld [vmem:[%s1725_s1 + $0x68] sm:$0xff] }
  0x1d   : > { %1302 = vmatprep.subr.msk.bf16.mxu0 %vm1434_vm1, %v1300_v22 }
  0x24   : > { %1305 = vmatpush3.bf16.xpose.msk.msra.mxu0 %vm1434_vm1, %v1303_v27 }
  0x25   : > { %1308 = vmatprep.subr.msk.bf16.mxu0 %vm1434_vm1, %v1306_v28 }
  0x2c   : > { %1311 = vmatpush3.bf16.xpose.msk.msra.mxu0 %vm1434_vm1, %v1309_v33 }
  0x2d   : > { %1314 = vmatprep.subr.msk.bf16.mxu0 %vm1434_vm1, %v1312_v34 }
  0x34   : > { %1317 = vmatpush3.bf16.xpose.msk.msra.mxu0 %vm1434_vm1, %v1315_v39 }
  0x35   : > { %1320 = vmatprep.subr.msk.bf16.mxu0 %vm1434_vm1, %v1318_v40 }
  0x3c   : > { %1323 = vmatpush3.bf16.xpose.msk.msra.mxu0 %vm1434_vm1, %v1321_v45 }
  0x3d   : > { %1326 = vmatprep.subr.msk.bf16.mxu0 %vm1434_vm1, %v1324_v46 }
  0x44   : > { %1329 = vmatpush3.bf16.xpose.msk.msra.mxu0 %vm1434_vm1, %v1327_v51 }
  0x45   : > { %1332 = vmatprep.subr.msk.bf16.mxu0 %vm1434_vm1, %v1330_v52 }
  0x4c   : > { %1335 = vmatpush3.bf16.xpose.msk.msra.mxu0 %vm1434_vm1, %v1333_v55  ;;  %v254_v55 = vld [vmem:[%s1725_s1 + $0x78] sm:$0xff] }
  0x53   : > { %1285 = vmatmul.mubr.msk.f32.vlgmr.msra.gmra.mrb[0].mxu0 %vm277_vm0, %v1414_v0 }
  0x54   : > { %1286 = vmatprep.mubr.msk.f32.mxu0 %vm277_vm0, %v248_v56 }
  0x57   : > { %1287 = vmatmul.mubr.msk.f32.gmra.mrb[2].mxu0 %vm277_vm0, %v248_v56  ;;  %v255_v56 = vld [vmem:[%s1725_s1 + $0x80] sm:$0xff] }
  0x86   : > { %v270_v63 = vpop.permute.xlu0 %269 }
  0x87   : > { %v464_v16 = vpop.permute.xlu1 %463 }
  0x8a   : > { %v275_v3 = vpop.permute.xlu0 %274 }
  0x8b   : > { %v546_v25 = vpop.permute.xlu1 %545 }
  0x8e   : > { %v626_v30 = vpop.permute.xlu0 %625 }
  0x8f   : > { %v707_v41 = vpop.permute.xlu1 %706 }
  0x92   : > { %v712_v43 = vpop.permute.xlu0 %711 }
  0x93   : > { %v804_v59 = vpop.permute.xlu1 %803 }
 0x126   : > { %v446_v0 = vpop.f32.mrb[0].mxu0 }
 0x127   : > { %v448_v1 = vpop.f32.mrb[1].mxu0  ;;  %v447_v2 = vadd.f32 %v446_v0, %v270_v63  ;;  %v809_v0 = vpop.permute.xlu0 %808 }
 0x128   : > { %v449_v4 = vadd.f32 %v448_v1, %v270_v63 }
 0x129   : > { %v457_v9 = vmax.f32 %v447_v2, 0.0 }
 0x12a   : > { %v452_v5 = vpop.f32.mrb[2].mxu0  ;;  %v458_v11 = vmax.f32 %v449_v4, 0.0 }
 0x12b   : > { %v453_v6 = vadd.f32 %v452_v5, %v275_v3  ;;  %v454_v7 = vpop.f32.mrb[3].mxu0 }
 0x12c   : > { %v455_v8 = vadd.f32 %v454_v7, %v275_v3 }
 0x12d   : > { %v459_v10 = vmax.f32 %v453_v6, 0.0 }
 0x12e   : > { %v460_v12 = vmax.f32 %v455_v8, 0.0 }
 0x12f   : > { %v1338_v13 = vpack.c.bf16 %v459_v10, %v457_v9 }
 0x130   : > { %v1336_v14 = vpack.c.bf16 %v460_v12, %v458_v11 }
 0x132   : > { %1337 = vmatprep.subr.bf16.mxu1 %v1336_v14 }
 0x133   : > { %1339 = vmatpush1.bf16.msra.mxu1 %v1338_v13 }
 0x136   : > { %1242 = vmatmul.mubr.msk.f32.vlgmr.msra.gmra.mrb[0].mxu1 %vm466_vm2, %v249_v15 }
 0x137   : > { %616 = vmatprep.mubr.f32.mxu1 %v1377_v57 }
 0x209   : > { %v536_v17 = vpop.f32.mrb[0].mxu1 }
 0x20a   : > { %v537_v18 = vadd.f32 %v536_v17, %v464_v16  ;;  %v538_v19 = vpop.f32.mrb[1].mxu1 }
 0x20b   : > { %v539_v20 = vadd.f32 %v538_v19, %v464_v16 }
 0x20c   : > { %v541_v22 = vmax.f32 %v537_v18, 0.0 }
 0x20d   : > { %v542_v21 = vmax.f32 %v539_v20, 0.0 }
 0x20f   : > { %552 = vmatprep.subr.mxu1 %v542_v21 }
 0x210   : > { %553 = vmatpush1.msra.mxu1 %v541_v22 }
 0x211   : > { %1243 = vmatmul.mubr.msk.f32.vlgmr.msra.gmra.mrb[2].mxu1 %vm548_vm3, %v250_v23 }
 0x212   : > { %695 = vmatprep.mubr.f32.mxu1 %v1377_v57 }
 0x2e4   : > { %v618_v24 = vpop.f32.mrb[2].mxu1 }
 0x2e5   : > { %v620_v26 = vpop.f32.mrb[3].mxu1  ;;  %v1546_v28 = vadd.f32 %v618_v24, %v546_v25 }
 0x2e6   : > { %v1544_v27 = vadd.f32 %v620_v26, %v546_v25 }
 0x2e8   : > { %631 = vmatprep.subr.mxu1 %v1544_v27 }
 0x2e9   : > { %632 = vmatpush1.msra.mxu1 %v1546_v28 }
 0x2ea   : > { %1244 = vmatmul.mubr.msk.f32.vlgmr.msra.gmra.mrb[4].mxu1 %vm548_vm3, %v251_v29 }
 0x2eb   : > { %784 = vmatprep.mubr.f32.mxu1 %v1377_v57 }
 0x3bd   : > { %v697_v31 = vpop.f32.mrb[4].mxu1 }
 0x3be   : > { %v698_v32 = vadd.f32 %v697_v31, %v626_v30  ;;  %v699_v33 = vpop.f32.mrb[5].mxu1 }
 0x3bf   : > { %v700_v34 = vadd.f32 %v699_v33, %v626_v30 }
 0x3c0   : > { %v702_v36 = vmax.f32 %v698_v32, 0.0 }
 0x3c1   : > { %v703_v35 = vmax.f32 %v700_v34, 0.0 }
 0x3c3   : > { %720 = vmatprep.subr.mxu1 %v703_v35 }
 0x3c4   : > { %721 = vmatpush1.msra.mxu1 %v702_v36 }
 0x3c5   : > { %1245 = vmatmul.mubr.msk.f32.vlgmr.msra.gmra.mrb[6].mxu1 %vm548_vm3, %v252_v37 }
 0x3c6   : > { %790 = vmatprep.mubr.f32.mxu1 %v1377_v57 }
 0x3c9   : > { %1246 = vmatmul.mubr.msk.f32.gmra.mrb[8].mxu1 %vm548_vm3, %v253_v38 }
 0x3ca   : > { %889 = vmatprep.mubr.f32.mxu1 %v1377_v57 }
 0x498   : > { %v786_v39 = vpop.f32.mrb[6].mxu1 }
 0x499   : > { %v788_v40 = vpop.f32.mrb[7].mxu1  ;;  %v787_v42 = vadd.f32 %v786_v39, %v707_v41 }
 0x49a   : > { %v789_v44 = vadd.f32 %v788_v40, %v707_v41 }
 0x49b   : > { %v797_v49 = vmax.f32 %v787_v42, 0.0 }
 0x49c   : > { %v792_v45 = vpop.f32.mrb[8].mxu1  ;;  %v798_v51 = vmax.f32 %v789_v44, 0.0 }
 0x49d   : > { %v793_v46 = vadd.f32 %v792_v45, %v712_v43  ;;  %v794_v47 = vpop.f32.mrb[9].mxu1 }
 0x49e   : > { %v795_v48 = vadd.f32 %v794_v47, %v712_v43 }
 0x49f   : > { %v799_v50 = vmax.f32 %v793_v46, 0.0 }
 0x4a0   : > { %v800_v52 = vmax.f32 %v795_v48, 0.0 }
 0x4a1   : > { %v1342_v53 = vpack.c.bf16 %v799_v50, %v797_v49 }
 0x4a2   : > { %v1340_v54 = vpack.c.bf16 %v800_v52, %v798_v51 }
 0x4a4   : > { %1341 = vmatprep.subr.bf16.mxu1 %v1340_v54 }
 0x4a5   : > { %1343 = vmatpush1.bf16.msra.mxu1 %v1342_v53 }
 0x4a8   : > { %1247 = vmatmul.mubr.msk.f32.vlgmr.msra.gmra.mrb[10].mxu1 %vm466_vm2, %v254_v55 }
 0x4a9   : > { %895 = vmatprep.mubr.f32.mxu1 %v1377_v57 }
 0x4ac   : > { %1248 = vmatmul.mubr.msk.f32.gmra.mrb[12].mxu1 %vm466_vm2, %v255_v56 }
 0x4ad   : > { %901 = vmatprep.mubr.f32.mxu1 %v1377_v57  ;;  %v814_v57 = vpop.permute.xlu1 %813 }
 0x4b0   : > { %1249 = vmatmul.mubr.msk.f32.gmra.mrb[14].mxu1 %vm466_vm2, %v256_v58 }
 0x57b   : > { %v891_v60 = vpop.f32.mrb[10].mxu1 }
 0x57c   : > { %v892_v61 = vadd.f32 %v891_v60, %v804_v59  ;;  %v893_v62 = vpop.f32.mrb[11].mxu1 }
 0x57d   : > { %v894_v63 = vadd.f32 %v893_v62, %v804_v59 }
 0x57e   : > { %1356 = vtanh.f32 %v892_v61 }
 0x57f   : > { %1358 = vtanh.f32 %v894_v63  ;;  %v897_v1 = vpop.f32.mrb[12].mxu1 }
 0x580   : > { %v898_v2 = vadd.f32 %v897_v1, %v809_v0  ;;  %v899_v3 = vpop.f32.mrb[13].mxu1 }
 0x581   : > { %v900_v4 = vadd.f32 %v899_v3, %v809_v0 }
 0x582   : > { %1360 = vtanh.f32 %v898_v2 }
 0x583   : > { %1362 = vtanh.f32 %v900_v4  ;;  %v903_v5 = vpop.f32.mrb[14].mxu1 }
 0x584   : > { %v904_v6 = vadd.f32 %v903_v5, %v814_v57  ;;  %v905_v7 = vpop.f32.mrb[15].mxu1 }
 0x585   : > { %v906_v8 = vadd.f32 %v905_v7, %v814_v57 }
 0x586   : > { %1364 = vtanh.f32 %v904_v6 }
 0x587   : > { %1366 = vtanh.f32 %v906_v8 }
 0x588   : > { %v1357_v9 = vpop.eup %1356 }
 0x589   : > { %v1359_v10 = vpop.eup %1358  ;;  %914 = vxpose.xlu0.b32.start [1/3] (short) %v1357_v9, 128 }
 0x58a   : > { %946 = vxpose.xlu1.b32.start [1/3] (short) %v1359_v10, 128 }
 0x58c   : > { %v1361_v11 = vpop.eup %1360 }
 0x58d   : > { %v1363_v12 = vpop.eup %1362  ;;  %915 = vxpose.xlu0.b32.cont [2/3] (short) %v1361_v11, 128 }
 0x58e   : > { %947 = vxpose.xlu1.b32.cont [2/3] (short) %v1363_v12, 128 }
 0x590   : > { %v1365_v13 = vpop.eup %1364 }
 0x591   : > { %v1367_v14 = vpop.eup %1366  ;;  %916 = vxpose.xlu0.b32.end [3/3] (short) %v1365_v13, 128 }
 0x592   : > { %948 = vxpose.xlu1.b32.end [3/3] (short) %v1367_v14, 128 }
 0x5c6   : > { %1010 = vxpose.xlu0.b32.start.end [1/1] (short) %v1546_v28, 128 }
 0x5c7   : > { %1042 = vxpose.xlu1.b32.start.end [1/1] (short) %v1544_v27, 128 }
 0x609   : > { %v930_v15 = vpop.trf.xlu0 }
 0x60a   : > { %v962_v16 = vpop.trf.xlu1  ;;  %978 = vst.msk [vmem:[%s1585_s14] sm:$0xff] %vm277_vm0, %v930_v15 }
 0x60b   : > { %994 = vst.msk [vmem:[%s1585_s14 + $0x80] sm:$0xff] %vm277_vm0, %v962_v16 }
 0x60d   : > { %v931_v17 = vpop.trf.xlu0 }
 0x60e   : > { %v963_v18 = vpop.trf.xlu1  ;;  %979 = vst.msk [vmem:[%s1585_s14 + $0x8] sm:$0xff] %vm277_vm0, %v931_v17 }
 0x60f   : > { %995 = vst.msk [vmem:[%s1585_s14 + $0x88] sm:$0xff] %vm277_vm0, %v963_v18 }
 0x611   : > { %v932_v19 = vpop.trf.xlu0 }
 0x612   : > { %v964_v20 = vpop.trf.xlu1  ;;  %980 = vst.msk [vmem:[%s1585_s14 + $0x10] sm:$0xff] %vm277_vm0, %v932_v19 }
 0x613   : > { %996 = vst.msk [vmem:[%s1585_s14 + $0x90] sm:$0xff] %vm277_vm0, %v964_v20 }
 0x615   : > { %v933_v21 = vpop.trf.xlu0 }
 0x616   : > { %v965_v22 = vpop.trf.xlu1  ;;  %981 = vst.msk [vmem:[%s1585_s14 + $0x18] sm:$0xff] %vm277_vm0, %v933_v21 }
 0x617   : > { %997 = vst.msk [vmem:[%s1585_s14 + $0x98] sm:$0xff] %vm277_vm0, %v965_v22 }
 0x619   : > { %v934_v23 = vpop.trf.xlu0 }
 0x61a   : > { %v966_v24 = vpop.trf.xlu1  ;;  %982 = vst.msk [vmem:[%s1585_s14 + $0x20] sm:$0xff] %vm277_vm0, %v934_v23 }
 0x61b   : > { %998 = vst.msk [vmem:[%s1585_s14 + $0xa0] sm:$0xff] %vm277_vm0, %v966_v24 }
 0x61d   : > { %v935_v25 = vpop.trf.xlu0 }
 0x61e   : > { %v967_v26 = vpop.trf.xlu1  ;;  %983 = vst.msk [vmem:[%s1585_s14 + $0x28] sm:$0xff] %vm277_vm0, %v935_v25 }
 0x61f   : > { %999 = vst.msk [vmem:[%s1585_s14 + $0xa8] sm:$0xff] %vm277_vm0, %v967_v26 }
 0x621   : > { %v936_v27 = vpop.trf.xlu0 }
 0x622   : > { %v968_v28 = vpop.trf.xlu1  ;;  %984 = vst.msk [vmem:[%s1585_s14 + $0x30] sm:$0xff] %vm277_vm0, %v936_v27 }
 0x623   : > { %1000 = vst.msk [vmem:[%s1585_s14 + $0xb0] sm:$0xff] %vm277_vm0, %v968_v28 }
 0x625   : > { %v937_v29 = vpop.trf.xlu0 }
 0x626   : > { %v969_v30 = vpop.trf.xlu1  ;;  %985 = vst.msk [vmem:[%s1585_s14 + $0x38] sm:$0xff] %vm277_vm0, %v937_v29 }
 0x627   : > { %1001 = vst.msk [vmem:[%s1585_s14 + $0xb8] sm:$0xff] %vm277_vm0, %v969_v30 }
 0x629   : > { %v938_v31 = vpop.trf.xlu0 }
 0x62a   : > { %v970_v32 = vpop.trf.xlu1  ;;  %986 = vst.msk [vmem:[%s1585_s14 + $0x40] sm:$0xff] %vm277_vm0, %v938_v31 }
 0x62b   : > { %1002 = vst.msk [vmem:[%s1585_s14 + $0xc0] sm:$0xff] %vm277_vm0, %v970_v32 }
 0x62d   : > { %v939_v33 = vpop.trf.xlu0 }
 0x62e   : > { %v971_v34 = vpop.trf.xlu1  ;;  %987 = vst.msk [vmem:[%s1585_s14 + $0x48] sm:$0xff] %vm277_vm0, %v939_v33 }
 0x62f   : > { %1003 = vst.msk [vmem:[%s1585_s14 + $0xc8] sm:$0xff] %vm277_vm0, %v971_v34 }
 0x631   : > { %v940_v35 = vpop.trf.xlu0 }
 0x632   : > { %v972_v36 = vpop.trf.xlu1  ;;  %988 = vst.msk [vmem:[%s1585_s14 + $0x50] sm:$0xff] %vm277_vm0, %v940_v35 }
 0x633   : > { %1004 = vst.msk [vmem:[%s1585_s14 + $0xd0] sm:$0xff] %vm277_vm0, %v972_v36 }
 0x635   : > { %v941_v37 = vpop.trf.xlu0 }
 0x636   : > { %v973_v38 = vpop.trf.xlu1  ;;  %989 = vst.msk [vmem:[%s1585_s14 + $0x58] sm:$0xff] %vm277_vm0, %v941_v37 }
 0x637   : > { %1005 = vst.msk [vmem:[%s1585_s14 + $0xd8] sm:$0xff] %vm277_vm0, %v973_v38 }
 0x639   : > { %v942_v39 = vpop.trf.xlu0 }
 0x63a   : > { %v974_v40 = vpop.trf.xlu1  ;;  %990 = vst.msk [vmem:[%s1585_s14 + $0x60] sm:$0xff] %vm277_vm0, %v942_v39 }
 0x63b   : > { %1006 = vst.msk [vmem:[%s1585_s14 + $0xe0] sm:$0xff] %vm277_vm0, %v974_v40 }
 0x63d   : > { %v943_v41 = vpop.trf.xlu0 }
 0x63e   : > { %v975_v42 = vpop.trf.xlu1  ;;  %991 = vst.msk [vmem:[%s1585_s14 + $0x68] sm:$0xff] %vm277_vm0, %v943_v41 }
 0x63f   : > { %1007 = vst.msk [vmem:[%s1585_s14 + $0xe8] sm:$0xff] %vm277_vm0, %v975_v42 }
 0x641   : > { %v944_v43 = vpop.trf.xlu0 }
 0x642   : > { %v976_v44 = vpop.trf.xlu1  ;;  %992 = vst.msk [vmem:[%s1585_s14 + $0x70] sm:$0xff] %vm277_vm0, %v944_v43 }
 0x643   : > { %1008 = vst.msk [vmem:[%s1585_s14 + $0xf0] sm:$0xff] %vm277_vm0, %v976_v44 }
 0x645   : > { %v945_v45 = vpop.trf.xlu0 }
 0x646   : > { %v977_v46 = vpop.trf.xlu1  ;;  %993 = vst.msk [vmem:[%s1585_s14 + $0x78] sm:$0xff] %vm277_vm0, %v945_v45 }
 0x647   : > { %1009 = vst.msk [vmem:[%s1585_s14 + $0xf8] sm:$0xff] %vm277_vm0, %v977_v46 }
 0x649   : > { %v1026_v47 = vpop.trf.xlu0 }
 0x64a   : > { %v1058_v48 = vpop.trf.xlu1  ;;  %1075 = vst.msk [vmem:[%s1655_s18] sm:$0xff] %vm1074_vm4, %v1026_v47 }
 0x64b   : > { %1091 = vst.msk [vmem:[%s1655_s18 + $0x80] sm:$0xff] %vm1074_vm4, %v1058_v48 }
 0x64d   : > { %v1027_v49 = vpop.trf.xlu0 }
 0x64e   : > { %v1059_v50 = vpop.trf.xlu1  ;;  %1076 = vst.msk [vmem:[%s1655_s18 + $0x8] sm:$0xff] %vm1074_vm4, %v1027_v49 }
 0x64f   : > { %1092 = vst.msk [vmem:[%s1655_s18 + $0x88] sm:$0xff] %vm1074_vm4, %v1059_v50 }
 0x651   : > { %v1028_v51 = vpop.trf.xlu0 }
 0x652   : > { %v1060_v52 = vpop.trf.xlu1  ;;  %1077 = vst.msk [vmem:[%s1655_s18 + $0x10] sm:$0xff] %vm1074_vm4, %v1028_v51 }
 0x653   : > { %1093 = vst.msk [vmem:[%s1655_s18 + $0x90] sm:$0xff] %vm1074_vm4, %v1060_v52 }
 0x655   : > { %v1029_v53 = vpop.trf.xlu0 }
 0x656   : > { %v1061_v54 = vpop.trf.xlu1  ;;  %1078 = vst.msk [vmem:[%s1655_s18 + $0x18] sm:$0xff] %vm1074_vm4, %v1029_v53 }
 0x657   : > { %1094 = vst.msk [vmem:[%s1655_s18 + $0x98] sm:$0xff] %vm1074_vm4, %v1061_v54 }
 0x659   : > { %v1030_v55 = vpop.trf.xlu0 }
 0x65a   : > { %v1062_v56 = vpop.trf.xlu1  ;;  %1079 = vst.msk [vmem:[%s1655_s18 + $0x20] sm:$0xff] %vm1074_vm4, %v1030_v55 }
 0x65b   : > { %1095 = vst.msk [vmem:[%s1655_s18 + $0xa0] sm:$0xff] %vm1074_vm4, %v1062_v56 }
 0x65d   : > { %v1031_v58 = vpop.trf.xlu0 }
 0x65e   : > { %v1063_v59 = vpop.trf.xlu1  ;;  %1080 = vst.msk [vmem:[%s1655_s18 + $0x28] sm:$0xff] %vm1074_vm4, %v1031_v58 }
 0x65f   : > { %1096 = vst.msk [vmem:[%s1655_s18 + $0xa8] sm:$0xff] %vm1074_vm4, %v1063_v59 }
 0x661   : > { %v1032_v60 = vpop.trf.xlu0 }
 0x662   : > { %v1064_v61 = vpop.trf.xlu1  ;;  %1081 = vst.msk [vmem:[%s1655_s18 + $0x30] sm:$0xff] %vm1074_vm4, %v1032_v60 }
 0x663   : > { %1097 = vst.msk [vmem:[%s1655_s18 + $0xb0] sm:$0xff] %vm1074_vm4, %v1064_v61 }
 0x665   : > { %v1033_v62 = vpop.trf.xlu0 }
 0x666   : > { %v1065_v63 = vpop.trf.xlu1  ;;  %1082 = vst.msk [vmem:[%s1655_s18 + $0x38] sm:$0xff] %vm1074_vm4, %v1033_v62 }
 0x667   : > { %1098 = vst.msk [vmem:[%s1655_s18 + $0xb8] sm:$0xff] %vm1074_vm4, %v1065_v63 }
 0x669   : > { %v1034_v0 = vpop.trf.xlu0 }
 0x66a   : > { %v1066_v1 = vpop.trf.xlu1  ;;  %1083 = vst.msk [vmem:[%s1655_s18 + $0x40] sm:$0xff] %vm1074_vm4, %v1034_v0 }
 0x66b   : > { %1099 = vst.msk [vmem:[%s1655_s18 + $0xc0] sm:$0xff] %vm1074_vm4, %v1066_v1 }
 0x66d   : > { %v1035_v2 = vpop.trf.xlu0 }
 0x66e   : > { %v1067_v3 = vpop.trf.xlu1  ;;  %1084 = vst.msk [vmem:[%s1655_s18 + $0x48] sm:$0xff] %vm1074_vm4, %v1035_v2 }
 0x66f   : > { %1100 = vst.msk [vmem:[%s1655_s18 + $0xc8] sm:$0xff] %vm1074_vm4, %v1067_v3 }
 0x671   : > { %v1036_v4 = vpop.trf.xlu0 }
 0x672   : > { %v1068_v57 = vpop.trf.xlu1  ;;  %1085 = vst.msk [vmem:[%s1655_s18 + $0x50] sm:$0xff] %vm1074_vm4, %v1036_v4 }
 0x673   : > { %1101 = vst.msk [vmem:[%s1655_s18 + $0xd0] sm:$0xff] %vm1074_vm4, %v1068_v57 }
 0x675   : > { %v1037_v5 = vpop.trf.xlu0 }
 0x676   : > { %v1069_v6 = vpop.trf.xlu1  ;;  %1086 = vst.msk [vmem:[%s1655_s18 + $0x58] sm:$0xff] %vm1074_vm4, %v1037_v5 }
 0x677   : > { %1102 = vst.msk [vmem:[%s1655_s18 + $0xd8] sm:$0xff] %vm1074_vm4, %v1069_v6 }
 0x679   : > { %v1038_v7 = vpop.trf.xlu0 }
 0x67a   : > { %v1070_v8 = vpop.trf.xlu1  ;;  %1087 = vst.msk [vmem:[%s1655_s18 + $0x60] sm:$0xff] %vm1074_vm4, %v1038_v7 }
 0x67b   : > { %1103 = vst.msk [vmem:[%s1655_s18 + $0xe0] sm:$0xff] %vm1074_vm4, %v1070_v8 }
 0x67d   : > { %v1039_v9 = vpop.trf.xlu0 }
 0x67e   : > { %v1071_v10 = vpop.trf.xlu1  ;;  %1088 = vst.msk [vmem:[%s1655_s18 + $0x68] sm:$0xff] %vm1074_vm4, %v1039_v9 }
 0x67f   : > { %1104 = vst.msk [vmem:[%s1655_s18 + $0xe8] sm:$0xff] %vm1074_vm4, %v1071_v10 }
 0x681   : > { %v1040_v11 = vpop.trf.xlu0 }
 0x682   : > { %v1072_v12 = vpop.trf.xlu1  ;;  %1089 = vst.msk [vmem:[%s1655_s18 + $0x70] sm:$0xff] %vm1074_vm4, %v1040_v11 }
 0x683   : > { %1105 = vst.msk [vmem:[%s1655_s18 + $0xf0] sm:$0xff] %vm1074_vm4, %v1072_v12 }
 0x685   : > { %v1041_v13 = vpop.trf.xlu0 }
 0x686   : > { %v1073_v14 = vpop.trf.xlu1  ;;  %1090 = vst.msk [vmem:[%s1655_s18 + $0x78] sm:$0xff] %vm1074_vm4, %v1041_v13 }
 0x687   : > { %1106 = vst.msk [vmem:[%s1655_s18 + $0xf8] sm:$0xff] %vm1074_vm4, %v1073_v14 }
 0x688 PF: > { %s15_s15 = sadd.s32 1, %s1374_s15  }
 0x689   : > { %p12_p4 = scmp.ge.s32.totalorder %s15_s15, 4  }
 0x68b   :  { %14 = sbr.rel (!%p12_p4) target bundleno = 1 (0x1), region = 74 }

</bundles_post_ra>
